<compile_context>
chip_gen: v7x
topology: tpu7x:2x2x1
jax: 0.10.0
libtpu: 0.0.40
codegen_flags: <defaults>
</compile_context>

<pallas_src>
import jax
import jax.numpy as jnp
from jax.experimental import pallas as pl


# ---------------------------------------------------------------------------
# Fused forward kernel factory
# ---------------------------------------------------------------------------
def _make_fused_kernel(num_graphs, nodes_per_graph, n_gcn, n_dnn):
    inv_n = 1.0 / float(nodes_per_graph)

    def kernel(*refs):
        # refs layout:
        #   [0] x      : (B*N, F)        flattened node features
        #   [1] a_blk  : (B*N, B*N)      block-diagonal adjacency
        #   [2] pool   : (B, B*N)        graph-membership (0/1) pooling matrix
        #   then per GCN layer:  W, bias, bn_scale, bn_shift
        #   then per DNN layer:  W, bias, bn_scale, bn_shift
        #   then:                Wo, bo
        #   last:                o_ref (output, (B, num_classes))
        x_ref, ablk_ref, pool_ref = refs[0], refs[1], refs[2]
        idx = 3
        gcn = [refs[idx + 4 * l: idx + 4 * l + 4] for l in range(n_gcn)]
        idx += 4 * n_gcn
        dnn = [refs[idx + 4 * l: idx + 4 * l + 4] for l in range(n_dnn)]
        idx += 4 * n_dnn
        wo_ref, bo_ref, o_ref = refs[idx], refs[idx + 1], refs[idx + 2]

        a = ablk_ref[...]                               # (B*N, B*N)
        deg = jnp.sum(a, axis=1, keepdims=True)         # (B*N, 1) row degrees
        d = jax.lax.rsqrt(deg + 1e-7)                   # D^{-1/2}, EUP rsqrt

        h = x_ref[...]                                  # (B*N, Fin)
        for (w_ref, b_ref, s_ref, t_ref) in gcn:
            # Linear (batch flattened into M)
            hw = jnp.dot(h, w_ref[...],
                         preferred_element_type=jnp.float32) + b_ref[...]
            # D^{-1/2} A D^{-1/2} @ HW  ==  d * (A @ (d * HW))
            agg = d * jnp.dot(a, d * hw,
                              preferred_element_type=jnp.float32)
            # ReLU -> BatchNorm (eval, folded affine) -> Dropout (identity)
            h = jnp.maximum(agg, 0.0) * s_ref[...] + t_ref[...]

        # mean over nodes of each graph: (B, B*N) @ (B*N, H) / N
        y = jnp.dot(pool_ref[...], h,
                    preferred_element_type=jnp.float32) * inv_n   # (B, H)

        for (w_ref, b_ref, s_ref, t_ref) in dnn:
            y = jnp.dot(y, w_ref[...],
                        preferred_element_type=jnp.float32) + b_ref[...]
            y = jnp.maximum(y, 0.0) * s_ref[...] + t_ref[...]

        o_ref[...] = jnp.dot(y, wo_ref[...],
                             preferred_element_type=jnp.float32) + bo_ref[...]

    return kernel


# ---------------------------------------------------------------------------
# Wrapper: layout plumbing (flatten batch, block-diag adjacency) + pallas_call
# ---------------------------------------------------------------------------
def forward(params, X, A):
    B, N, F = X.shape
    n_gcn = len(params["gcn"])
    n_dnn = len(params["dnn"])
    Wo, bo = params["out"]
    num_classes = Wo.shape[1]

    # Pure layout prep in plain JAX (no compute hoisted out of the kernel):
    x_flat = X.reshape(B * N, F)
    eye = jnp.eye(B, dtype=jnp.float32)
    a_blk = jnp.einsum("bc,bij->bicj", eye, A).reshape(B * N, B * N)
    pool = jnp.repeat(eye, N, axis=1)                   # (B, B*N), 0/1 membership

    args = [x_flat, a_blk, pool]
    for p in params["gcn"]:
        args.extend(p)
    for p in params["dnn"]:
        args.extend(p)
    args.extend([Wo, bo])

    kernel = _make_fused_kernel(B, N, n_gcn, n_dnn)
    return pl.pallas_call(
        kernel,
        out_shape=jax.ShapeDtypeStruct((B, num_classes), jnp.float32),
    )(*args)


# ---------------------------------------------------------------------------
# Parameter init (deterministic, synthetic) + pure-JAX reference
# ---------------------------------------------------------------------------
def init_params(key, num_features, hidden_channels, num_gcn_layers,
                dnn_hidden_nodes, num_dnn_layers, num_classes=1):
    def linear_init(k, fan_in, fan_out):
        kw, kb = jax.random.split(k)
        bound = 1.0 / jnp.sqrt(fan_in)
        W = jax.random.uniform(kw, (fan_in, fan_out), jnp.float32, -bound, bound)
        b = jax.random.uniform(kb, (1, fan_out), jnp.float32, -bound, bound)
        return W, b

    def bn_init(k, num):
        # eval-mode BatchNorm folded to affine: scale = gamma/sqrt(var+eps),
        # shift = beta - mean*scale  (deterministic synthetic running stats)
        kg, kb, km, kv = jax.random.split(k, 4)
        gamma = 1.0 + 0.1 * jax.random.normal(kg, (1, num), jnp.float32)
        beta = 0.1 * jax.random.normal(kb, (1, num), jnp.float32)
        rmean = 0.1 * jax.random.normal(km, (1, num), jnp.float32)
        rvar = 1.0 + 0.1 * jax.random.uniform(kv, (1, num), jnp.float32)
        eps = 1e-5
        scale = gamma / jnp.sqrt(rvar + eps)
        shift = beta - rmean * scale
        return scale, shift

    params = {"gcn": [], "dnn": []}
    fin = num_features
    for _ in range(num_gcn_layers):
        key, k1, k2 = jax.random.split(key, 3)
        W, b = linear_init(k1, fin, hidden_channels)
        s, t = bn_init(k2, hidden_channels)
        params["gcn"].append((W, b, s, t))
        fin = hidden_channels
    for _ in range(num_dnn_layers):
        key, k1, k2 = jax.random.split(key, 3)
        W, b = linear_init(k1, fin, dnn_hidden_nodes)
        s, t = bn_init(k2, dnn_hidden_nodes)
        params["dnn"].append((W, b, s, t))
        fin = dnn_hidden_nodes
    key, k1 = jax.random.split(key)
    params["out"] = linear_init(k1, fin, num_classes)
    return params


def reference(params, X, A):
    # Faithful pure-JAX mirror of the PyTorch module (eval mode).
    deg = jnp.sum(A, axis=2)
    d = (deg + 1e-7) ** -0.5
    A_norm = A * d[:, :, None] * d[:, None, :]
    for (W, b, s, t) in params["gcn"]:
        X = X @ W + b
        X = jnp.einsum("bij,bjh->bih", A_norm, X)
        X = jnp.maximum(X, 0.0)
        X = X * s + t
    X = jnp.mean(X, axis=1)
    for (W, b, s, t) in params["dnn"]:
        X = jnp.maximum(X @ W + b, 0.0) * s + t
    Wo, bo = params["out"]
    return X @ Wo + bo


if __name__ == "__main__":
    # Small shapes consistent with the module: batch=2 graphs, 8 nodes,
    # 16 input features, hidden_channels=32, 2 GCN layers,
    # dnn_hidden_nodes=32, 2 DNN layers, num_classes=1.
    B, N = 2, 8
    num_features, hidden_channels = 16, 32
    num_gcn_layers, num_dnn_layers = 2, 2
    dnn_hidden_nodes, num_classes = 32, 1

    key = jax.random.PRNGKey(0)
    kx, ka, kp = jax.random.split(key, 3)
    X = jax.random.normal(kx, (B, N, num_features), jnp.float32)
    A_raw = jax.random.uniform(ka, (B, N, N), jnp.float32)
    A = ((A_raw + jnp.swapaxes(A_raw, 1, 2)) > 1.0).astype(jnp.float32)  # symmetric 0/1

    params = init_params(kp, num_features, hidden_channels, num_gcn_layers,
                         dnn_hidden_nodes, num_dnn_layers, num_classes)

    out = forward(params, X, A)
    out = jax.block_until_ready(out)

    ref = reference(params, X, A)
    assert out.shape == (B, num_classes)
    assert jnp.allclose(out, ref, rtol=1e-4, atol=1e-4), (out, ref)
    print("KERNEL_OK")
</pallas_src>

<mosaic_0001>
module attributes {stable_mosaic.version = 11 : i64} {
  func.func @kernel(%arg0: memref<16x16xf32, #tpu.memory_space<vmem>>, %arg1: memref<16x16xf32, #tpu.memory_space<vmem>>, %arg2: memref<2x16xf32, #tpu.memory_space<vmem>>, %arg3: memref<16x32xf32, #tpu.memory_space<vmem>>, %arg4: memref<1x32xf32, #tpu.memory_space<vmem>>, %arg5: memref<1x32xf32, #tpu.memory_space<vmem>>, %arg6: memref<1x32xf32, #tpu.memory_space<vmem>>, %arg7: memref<32x32xf32, #tpu.memory_space<vmem>>, %arg8: memref<1x32xf32, #tpu.memory_space<vmem>>, %arg9: memref<1x32xf32, #tpu.memory_space<vmem>>, %arg10: memref<1x32xf32, #tpu.memory_space<vmem>>, %arg11: memref<32x32xf32, #tpu.memory_space<vmem>>, %arg12: memref<1x32xf32, #tpu.memory_space<vmem>>, %arg13: memref<1x32xf32, #tpu.memory_space<vmem>>, %arg14: memref<1x32xf32, #tpu.memory_space<vmem>>, %arg15: memref<32x32xf32, #tpu.memory_space<vmem>>, %arg16: memref<1x32xf32, #tpu.memory_space<vmem>>, %arg17: memref<1x32xf32, #tpu.memory_space<vmem>>, %arg18: memref<1x32xf32, #tpu.memory_space<vmem>>, %arg19: memref<32x1xf32, #tpu.memory_space<vmem>>, %arg20: memref<1x1xf32, #tpu.memory_space<vmem>>, %arg21: memref<2x1xf32, #tpu.memory_space<vmem>>) attributes {dimension_semantics = [], scalar_prefetch = 0 : i64, scratch_operands = 0 : i64, tpu.core_type = #tpu.core_type<tc>} {
    %c0 = arith.constant 0 : index
    %c0_0 = arith.constant 0 : index
    %0 = vector.load %arg1[%c0, %c0_0] : memref<16x16xf32, #tpu.memory_space<vmem>>, vector<16x16xf32>
    %cst = arith.constant dense<0.000000e+00> : vector<16xf32>
    %1 = vector.multi_reduction <add>, %0, %cst [1] : vector<16x16xf32> to vector<16xf32>
    %2 = vector.shape_cast %1 : vector<16xf32> to vector<16x1xf32>
    %cst_1 = arith.constant 1.000000e-07 : f32
    %3 = vector.broadcast %cst_1 : f32 to vector<16x1xf32>
    %4 = arith.addf %2, %3 : vector<16x1xf32>
    %5 = math.rsqrt %4 : vector<16x1xf32>
    %c0_2 = arith.constant 0 : index
    %c0_3 = arith.constant 0 : index
    %6 = vector.load %arg0[%c0_2, %c0_3] : memref<16x16xf32, #tpu.memory_space<vmem>>, vector<16x16xf32>
    %c0_4 = arith.constant 0 : index
    %c0_5 = arith.constant 0 : index
    %7 = vector.load %arg3[%c0_4, %c0_5] : memref<16x32xf32, #tpu.memory_space<vmem>>, vector<16x32xf32>
    %cst_6 = arith.constant dense<0.000000e+00> : vector<16x32xf32>
    %8 = tpu.matmul %6, %7, %cst_6 {dimension_numbers = #tpu.dot_dimension_numbers<[1], [0], [0], [1], [0, 0, 1, 1], [], []>} : vector<16x16xf32>, vector<16x32xf32>, vector<16x32xf32> -> vector<16x32xf32>
    %c0_7 = arith.constant 0 : index
    %c0_8 = arith.constant 0 : index
    %9 = vector.load %arg4[%c0_7, %c0_8] : memref<1x32xf32, #tpu.memory_space<vmem>>, vector<1x32xf32>
    %10 = vector.broadcast %9 : vector<1x32xf32> to vector<16x32xf32>
    %11 = arith.addf %8, %10 : vector<16x32xf32>
    %12 = vector.broadcast %5 : vector<16x1xf32> to vector<16x32xf32>
    %13 = arith.mulf %12, %11 : vector<16x32xf32>
    %cst_9 = arith.constant dense<0.000000e+00> : vector<16x32xf32>
    %14 = tpu.matmul %0, %13, %cst_9 {dimension_numbers = #tpu.dot_dimension_numbers<[1], [0], [0], [1], [0, 0, 1, 1], [], []>} : vector<16x16xf32>, vector<16x32xf32>, vector<16x32xf32> -> vector<16x32xf32>
    %15 = vector.broadcast %5 : vector<16x1xf32> to vector<16x32xf32>
    %16 = arith.mulf %15, %14 : vector<16x32xf32>
    %cst_10 = arith.constant 0.000000e+00 : f32
    %17 = vector.broadcast %cst_10 : f32 to vector<16x32xf32>
    %18 = arith.maximumf %16, %17 : vector<16x32xf32>
    %c0_11 = arith.constant 0 : index
    %c0_12 = arith.constant 0 : index
    %19 = vector.load %arg5[%c0_11, %c0_12] : memref<1x32xf32, #tpu.memory_space<vmem>>, vector<1x32xf32>
    %20 = vector.broadcast %19 : vector<1x32xf32> to vector<16x32xf32>
    %21 = arith.mulf %18, %20 : vector<16x32xf32>
    %c0_13 = arith.constant 0 : index
    %c0_14 = arith.constant 0 : index
    %22 = vector.load %arg6[%c0_13, %c0_14] : memref<1x32xf32, #tpu.memory_space<vmem>>, vector<1x32xf32>
    %23 = vector.broadcast %22 : vector<1x32xf32> to vector<16x32xf32>
    %24 = arith.addf %21, %23 : vector<16x32xf32>
    %c0_15 = arith.constant 0 : index
    %c0_16 = arith.constant 0 : index
    %25 = vector.load %arg7[%c0_15, %c0_16] : memref<32x32xf32, #tpu.memory_space<vmem>>, vector<32x32xf32>
    %cst_17 = arith.constant dense<0.000000e+00> : vector<16x32xf32>
    %26 = tpu.matmul %24, %25, %cst_17 {dimension_numbers = #tpu.dot_dimension_numbers<[1], [0], [0], [1], [0, 0, 1, 1], [], []>} : vector<16x32xf32>, vector<32x32xf32>, vector<16x32xf32> -> vector<16x32xf32>
    %c0_18 = arith.constant 0 : index
    %c0_19 = arith.constant 0 : index
    %27 = vector.load %arg8[%c0_18, %c0_19] : memref<1x32xf32, #tpu.memory_space<vmem>>, vector<1x32xf32>
    %28 = vector.broadcast %27 : vector<1x32xf32> to vector<16x32xf32>
    %29 = arith.addf %26, %28 : vector<16x32xf32>
    %30 = vector.broadcast %5 : vector<16x1xf32> to vector<16x32xf32>
    %31 = arith.mulf %30, %29 : vector<16x32xf32>
    %cst_20 = arith.constant dense<0.000000e+00> : vector<16x32xf32>
    %32 = tpu.matmul %0, %31, %cst_20 {dimension_numbers = #tpu.dot_dimension_numbers<[1], [0], [0], [1], [0, 0, 1, 1], [], []>} : vector<16x16xf32>, vector<16x32xf32>, vector<16x32xf32> -> vector<16x32xf32>
    %33 = vector.broadcast %5 : vector<16x1xf32> to vector<16x32xf32>
    %34 = arith.mulf %33, %32 : vector<16x32xf32>
    %cst_21 = arith.constant 0.000000e+00 : f32
    %35 = vector.broadcast %cst_21 : f32 to vector<16x32xf32>
    %36 = arith.maximumf %34, %35 : vector<16x32xf32>
    %c0_22 = arith.constant 0 : index
    %c0_23 = arith.constant 0 : index
    %37 = vector.load %arg9[%c0_22, %c0_23] : memref<1x32xf32, #tpu.memory_space<vmem>>, vector<1x32xf32>
    %38 = vector.broadcast %37 : vector<1x32xf32> to vector<16x32xf32>
    %39 = arith.mulf %36, %38 : vector<16x32xf32>
    %c0_24 = arith.constant 0 : index
    %c0_25 = arith.constant 0 : index
    %40 = vector.load %arg10[%c0_24, %c0_25] : memref<1x32xf32, #tpu.memory_space<vmem>>, vector<1x32xf32>
    %41 = vector.broadcast %40 : vector<1x32xf32> to vector<16x32xf32>
    %42 = arith.addf %39, %41 : vector<16x32xf32>
    %c0_26 = arith.constant 0 : index
    %c0_27 = arith.constant 0 : index
    %43 = vector.load %arg2[%c0_26, %c0_27] : memref<2x16xf32, #tpu.memory_space<vmem>>, vector<2x16xf32>
    %cst_28 = arith.constant dense<0.000000e+00> : vector<2x32xf32>
    %44 = tpu.matmul %43, %42, %cst_28 {dimension_numbers = #tpu.dot_dimension_numbers<[1], [0], [0], [1], [0, 0, 1, 1], [], []>} : vector<2x16xf32>, vector<16x32xf32>, vector<2x32xf32> -> vector<2x32xf32>
    %cst_29 = arith.constant 1.250000e-01 : f32
    %45 = vector.broadcast %cst_29 : f32 to vector<2x32xf32>
    %46 = arith.mulf %44, %45 : vector<2x32xf32>
    %c0_30 = arith.constant 0 : index
    %c0_31 = arith.constant 0 : index
    %47 = vector.load %arg11[%c0_30, %c0_31] : memref<32x32xf32, #tpu.memory_space<vmem>>, vector<32x32xf32>
    %cst_32 = arith.constant dense<0.000000e+00> : vector<2x32xf32>
    %48 = tpu.matmul %46, %47, %cst_32 {dimension_numbers = #tpu.dot_dimension_numbers<[1], [0], [0], [1], [0, 0, 1, 1], [], []>} : vector<2x32xf32>, vector<32x32xf32>, vector<2x32xf32> -> vector<2x32xf32>
    %c0_33 = arith.constant 0 : index
    %c0_34 = arith.constant 0 : index
    %49 = vector.load %arg12[%c0_33, %c0_34] : memref<1x32xf32, #tpu.memory_space<vmem>>, vector<1x32xf32>
    %50 = vector.broadcast %49 : vector<1x32xf32> to vector<2x32xf32>
    %51 = arith.addf %48, %50 : vector<2x32xf32>
    %cst_35 = arith.constant 0.000000e+00 : f32
    %52 = vector.broadcast %cst_35 : f32 to vector<2x32xf32>
    %53 = arith.maximumf %51, %52 : vector<2x32xf32>
    %c0_36 = arith.constant 0 : index
    %c0_37 = arith.constant 0 : index
    %54 = vector.load %arg13[%c0_36, %c0_37] : memref<1x32xf32, #tpu.memory_space<vmem>>, vector<1x32xf32>
    %55 = vector.broadcast %54 : vector<1x32xf32> to vector<2x32xf32>
    %56 = arith.mulf %53, %55 : vector<2x32xf32>
    %c0_38 = arith.constant 0 : index
    %c0_39 = arith.constant 0 : index
    %57 = vector.load %arg14[%c0_38, %c0_39] : memref<1x32xf32, #tpu.memory_space<vmem>>, vector<1x32xf32>
    %58 = vector.broadcast %57 : vector<1x32xf32> to vector<2x32xf32>
    %59 = arith.addf %56, %58 : vector<2x32xf32>
    %c0_40 = arith.constant 0 : index
    %c0_41 = arith.constant 0 : index
    %60 = vector.load %arg15[%c0_40, %c0_41] : memref<32x32xf32, #tpu.memory_space<vmem>>, vector<32x32xf32>
    %cst_42 = arith.constant dense<0.000000e+00> : vector<2x32xf32>
    %61 = tpu.matmul %59, %60, %cst_42 {dimension_numbers = #tpu.dot_dimension_numbers<[1], [0], [0], [1], [0, 0, 1, 1], [], []>} : vector<2x32xf32>, vector<32x32xf32>, vector<2x32xf32> -> vector<2x32xf32>
    %c0_43 = arith.constant 0 : index
    %c0_44 = arith.constant 0 : index
    %62 = vector.load %arg16[%c0_43, %c0_44] : memref<1x32xf32, #tpu.memory_space<vmem>>, vector<1x32xf32>
    %63 = vector.broadcast %62 : vector<1x32xf32> to vector<2x32xf32>
    %64 = arith.addf %61, %63 : vector<2x32xf32>
    %cst_45 = arith.constant 0.000000e+00 : f32
    %65 = vector.broadcast %cst_45 : f32 to vector<2x32xf32>
    %66 = arith.maximumf %64, %65 : vector<2x32xf32>
    %c0_46 = arith.constant 0 : index
    %c0_47 = arith.constant 0 : index
    %67 = vector.load %arg17[%c0_46, %c0_47] : memref<1x32xf32, #tpu.memory_space<vmem>>, vector<1x32xf32>
    %68 = vector.broadcast %67 : vector<1x32xf32> to vector<2x32xf32>
    %69 = arith.mulf %66, %68 : vector<2x32xf32>
    %c0_48 = arith.constant 0 : index
    %c0_49 = arith.constant 0 : index
    %70 = vector.load %arg18[%c0_48, %c0_49] : memref<1x32xf32, #tpu.memory_space<vmem>>, vector<1x32xf32>
    %71 = vector.broadcast %70 : vector<1x32xf32> to vector<2x32xf32>
    %72 = arith.addf %69, %71 : vector<2x32xf32>
    %c0_50 = arith.constant 0 : index
    %c0_51 = arith.constant 0 : index
    %73 = vector.load %arg19[%c0_50, %c0_51] : memref<32x1xf32, #tpu.memory_space<vmem>>, vector<32x1xf32>
    %cst_52 = arith.constant dense<0.000000e+00> : vector<2x1xf32>
    %74 = tpu.matmul %72, %73, %cst_52 {dimension_numbers = #tpu.dot_dimension_numbers<[1], [0], [0], [1], [0, 0, 1, 1], [], []>} : vector<2x32xf32>, vector<32x1xf32>, vector<2x1xf32> -> vector<2x1xf32>
    %c0_53 = arith.constant 0 : index
    %c0_54 = arith.constant 0 : index
    %75 = vector.load %arg20[%c0_53, %c0_54] : memref<1x1xf32, #tpu.memory_space<vmem>>, vector<1x1xf32>
    %76 = vector.broadcast %75 : vector<1x1xf32> to vector<2x1xf32>
    %77 = arith.addf %74, %76 : vector<2x1xf32>
    %c0_55 = arith.constant 0 : index
    %c0_56 = arith.constant 0 : index
    %78 = vector.load %arg21[%c0_55, %c0_56] : memref<2x1xf32, #tpu.memory_space<vmem>>, vector<2x1xf32>
    tpu.vector_store %arg21[%c0_55, %c0_56], %77 {strides = array<i32>} : memref<2x1xf32, #tpu.memory_space<vmem>>, vector<2x1xf32>,
    return
  }
}

</mosaic_0001>

<bundles_post_ra>
// kernel: tpu_custom_call.1
= control target key start
LH: loop header
LB: loop body
LE: loop exit
PB: predicated region body
PF: predicated region fallthrough
CT: control target
= control target key end

     0   :  { %s1612_s0 = inlined_call_operand.hbm [shape: f32[16,16], index: 0, kind: input, shape index: {}]   ;;  %s1613_s1 = inlined_call_operand.hbm [shape: f32[16,16], index: 1, kind: input, shape index: {}]   ;;  %s1614_s2 = inlined_call_operand.vmem [shape: f32[2,16], index: 2, kind: input, shape index: {}]   ;;  %s1615_s3 = inlined_call_operand.hbm [shape: f32[16,32], index: 3, kind: input, shape index: {}]   ;;  %s1616_s4 = inlined_call_operand.vmem [shape: f32[1,32], index: 4, kind: input, shape index: {}]   ;;  %s1617_s5 = inlined_call_operand.hbm [shape: f32[1,32], index: 5, kind: input, shape index: {}]   ;;  %s1618_s6 = inlined_call_operand.hbm [shape: f32[1,32], index: 6, kind: input, shape index: {}]   ;;  %s1619_s7 = inlined_call_operand.vmem [shape: f32[32,32], index: 7, kind: input, shape index: {}]   ;;  %s1620_s8 = inlined_call_operand.hbm [shape: f32[1,32], index: 8, kind: input, shape index: {}]   ;;  %s1621_s9 = inlined_call_operand.vmem [shape: f32[1,32], index: 9, kind: input, shape index: {}]   ;;  %s1622_s10 = inlined_call_operand.vmem [shape: f32[1,32], index: 10, kind: input, shape index: {}]   ;;  %s1623_s11 = inlined_call_operand.vmem [shape: f32[32,32], index: 11, kind: input, shape index: {}]   ;;  %s1624_s12 = inlined_call_operand.vmem [shape: f32[1,32], index: 12, kind: input, shape index: {}]   ;;  %s1625_s13 = inlined_call_operand.vmem [shape: f32[1,32], index: 13, kind: input, shape index: {}]   ;;  %s1626_s14 = inlined_call_operand.vmem [shape: f32[1,32], index: 14, kind: input, shape index: {}]   ;;  %s1627_s15 = inlined_call_operand.hbm [shape: f32[32,32], index: 15, kind: input, shape index: {}]   ;;  %s1628_s16 = inlined_call_operand.vmem [shape: f32[1,32], index: 16, kind: input, shape index: {}]   ;;  %s1629_s17 = inlined_call_operand.vmem [shape: f32[1,32], index: 17, kind: input, shape index: {}]   ;;  %s1630_s18 = inlined_call_operand.vmem [shape: f32[1,32], index: 18, kind: input, shape index: {}]   ;;  %s1631_s19 = inlined_call_operand.vmem [shape: f32[32,1], index: 19, kind: input, shape index: {}]   ;;  %s1632_s20 = inlined_call_operand.<no memory space> [shape: f32[1,1], index: 20, kind: input, shape index: {}]   ;;  %s1633_s21 = inlined_call_operand.vmem [shape: f32[2,1], index: 21, kind: output, shape index: {}]  }
   0x1   :  { %1640 = sst [smem:[#allocation18_spill]] %s1612_s0  ;;  %v26_v0 = vstv %s1632_s20 }
   0x2   :  { %1641 = sst [smem:[#allocation19_spill]] %s1613_s1  ;;  %27 = vst [vmem:[#allocation2] sm:$0x1] %v26_v0 }
   0x3   :  { %1642 = sst [smem:[#allocation20_spill]] %s1614_s2 }
   0x4   :  { %1643 = sst [smem:[#allocation21_spill]] %s1615_s3 }
   0x5   :  { %1644 = sst [smem:[#allocation22_spill]] %s1616_s4 }
   0x6   :  { %1645 = sst [smem:[#allocation23_spill]] %s1617_s5 }
   0x7   :  { %1646 = sst [smem:[#allocation24_spill]] %s1633_s21 }
   0x8   :  { %28 = vsyncpa [#allocation4], 0 }
   0x9   :  { %29 = vsyncpa [#allocation6], 0 }
   0xa   :  { %30 = vsyncpa [#allocation9], 0 }
   0xb   :  { %31 = vsyncpa [#allocation12], 0  ;;  %s1284_s26 = smov [#allocation5]   ;;  %s1285_s3 = smov [#allocation8]  }
   0xc   :  { %s49_s27 = sshll.u32 %s1284_s26, 4  ;;  %s78_s28 = sshll.u32 %s1285_s3, 4  ;;  %s50_s27 = int_to_ptr.vmem [resolvable:$true] %s49_s27  ;;  %s1409_s28 = int_to_ptr.vmem [resolvable:$true] %s78_s28 }
   0xd   :  { %s1647_s4 = sld [smem:[#allocation19_spill]] }
  0x13   :  { %s1122_s30 = scalar_lea.hbm %s1647_s4, 256 }
  0x14   :  { %p1123_p0 = scmp.ne.s32.totalorder %s1647_s4, %s1122_s30  ;;  %p1126_p1 = scmp.lt.u32.totalorder %s1122_s30, %s1647_s4 }
  0x16   :  { %p1128_p2 = pnand %p1126_p1, %p1123_p0 }
  0x18   :  { %1131 = shalt.err (!%p1128_p2)
}
  0x19   :  { %s1132_s1 = scalar_lea.vmem %s50_s27, 256  ;;  %p1137_p4 = scmp.lt.s32.totalorder %s50_s27, %s50_s27 }
  0x1a   :  { %p1133_p3 = scmp.ne.s32.totalorder %s50_s27, %s1132_s1  ;;  %p1138_p5 = scmp.lt.s32.totalorder %s1132_s1, %s1132_s1 }
  0x1c   :  { %p1139_p6 = por %p1138_p5, %p1137_p4 }
  0x1e   :  { %p1140_p7 = pnand %p1139_p6, %p1133_p3 }
  0x20   :  { %1143 = shalt.err (!%p1140_p7)
}
  0x21   :  { %s1638_s24 = smov 128   ;;  %s1287_s2 = smov 8  }
  0x22   :  { %55 = dma.hbm_to_vmem [thread:$0]  %s1647_s4, 256, %s50_s27, [#allocation6], %s1638_s24, %s1638_s24, %s1287_s2  }
  0x23   :  { %s1648_s0 = sld [smem:[#allocation23_spill]] }
  0x29   :  { %s1144_s30 = scalar_lea.hbm %s1648_s0, 16 }
  0x2a   :  { %p1145_p8 = scmp.ne.s32.totalorder %s1648_s0, %s1144_s30  ;;  %p1148_p9 = scmp.lt.u32.totalorder %s1144_s30, %s1648_s0 }
  0x2c   :  { %p1150_p10 = pnand %p1148_p9, %p1145_p8 }
  0x2e   :  { %1153 = shalt.err (!%p1150_p10)
}
  0x2f   :  { %s1154_s1 = scalar_lea.vmem %s1409_s28, 16  ;;  %s1158_s27 = scalar_lea.vmem %s1409_s28, 32 }
  0x30   :  { %p1155_p11 = scmp.ne.s32.totalorder %s1409_s28, %s1154_s1  ;;  %p1159_p12 = scmp.lt.s32.totalorder %s1409_s28, %s1409_s28 }
  0x31   :  { %p1160_p13 = scmp.lt.s32.totalorder %s1158_s27, %s1154_s1 }
  0x33   :  { %p1161_p0 = por %p1160_p13, %p1159_p12 }
  0x35   :  { %p1162_p1 = pnand %p1161_p0, %p1155_p11 }
  0x37   :  { %1165 = shalt.err (!%p1162_p1)
}
  0x38   :  { %81 = dma.hbm_to_vmem [thread:$0]  %s1648_s0, 16, %s1409_s28, [#allocation9]  }
  0x39   :  { %s1288_s26 = smov [#allocation11]   ;;  %s1289_s29 = smov [#allocation3]  }
  0x3a   :  { %s100_s3 = sshll.u32 %s1288_s26, 4  ;;  %s37_s30 = sshll.u32 %s1289_s29, 4  ;;  %s101_s3 = int_to_ptr.vmem [resolvable:$true] %s100_s3  ;;  %s1444_s30 = int_to_ptr.vmem [resolvable:$true] %s37_s30 }
  0x3b   :  { %s1166_s20 = scalar_lea.hbm %s1620_s8, 16 }
  0x3c   :  { %p1167_p2 = scmp.ne.s32.totalorder %s1620_s8, %s1166_s20  ;;  %p1170_p3 = scmp.lt.u32.totalorder %s1166_s20, %s1620_s8 }
  0x3e   :  { %p1172_p4 = pnand %p1170_p3, %p1167_p2 }
  0x40   :  { %1175 = shalt.err (!%p1172_p4)
}
  0x41   :  { %s1176_s28 = scalar_lea.vmem %s101_s3, 16  ;;  %s1180_s0 = scalar_lea.vmem %s101_s3, 32 }
  0x42   :  { %p1177_p5 = scmp.ne.s32.totalorder %s101_s3, %s1176_s28  ;;  %p1181_p6 = scmp.lt.s32.totalorder %s101_s3, %s101_s3 }
  0x43   :  { %p1182_p7 = scmp.lt.s32.totalorder %s1180_s0, %s1176_s28 }
  0x45   :  { %p1183_p8 = por %p1182_p7, %p1181_p6 }
  0x47   :  { %p1184_p9 = pnand %p1183_p8, %p1177_p5 }
  0x49   :  { %1187 = shalt.err (!%p1184_p9)
}
  0x4a   :  { %103 = dma.hbm_to_vmem [thread:$0]  %s1620_s8, 16, %s101_s3, [#allocation12]  }
  0x4b   :  { %s1649_s5 = sld [smem:[#allocation18_spill]] }
  0x51   :  { %s1188_s22 = scalar_lea.hbm %s1649_s5, 256 }
  0x52   :  { %p1189_p10 = scmp.ne.s32.totalorder %s1649_s5, %s1188_s22  ;;  %p1192_p11 = scmp.lt.u32.totalorder %s1188_s22, %s1649_s5 }
  0x54   :  { %p1194_p12 = pnand %p1192_p11, %p1189_p10 }
  0x56   :  { %1197 = shalt.err (!%p1194_p12)
}
  0x57   :  { %s1198_s27 = scalar_lea.vmem %s1444_s30, 256  ;;  %p1203_p0 = scmp.lt.s32.totalorder %s1444_s30, %s1444_s30 }
  0x58   :  { %p1199_p13 = scmp.ne.s32.totalorder %s1444_s30, %s1198_s27  ;;  %p1204_p1 = scmp.lt.s32.totalorder %s1198_s27, %s1198_s27 }
  0x5a   :  { %p1205_p2 = por %p1204_p1, %p1203_p0 }
  0x5c   :  { %p1206_p3 = pnand %p1205_p2, %p1199_p13 }
  0x5e   :  { %1209 = shalt.err (!%p1206_p3)
}
  0x5f   :  { %s1650_s8 = smov 128   ;;  %s1290_s0 = smov [#allocation7]  }
  0x60   :  { %43 = dma.hbm_to_vmem [thread:$0]  %s1649_s5, 256, %s1444_s30, [#allocation4], %s1650_s8, %s1650_s8, %s1287_s2  }
  0x61   :  { %s63_s4 = sshll.u32 %s1290_s0, 4  ;;  %s1291_s25 = smov [#allocation10]   ;;  %s64_s4 = int_to_ptr.vmem [resolvable:$true] %s63_s4 }
  0x62   :  { %s88_s26 = sshll.u32 %s1291_s25, 4  ;;  %s1651_s24 = sld [smem:[#allocation21_spill]]  ;;  %s89_s26 = int_to_ptr.vmem [resolvable:$true] %s88_s26 }
  0x68   :  { %s1210_s20 = scalar_lea.hbm %s1651_s24, 256 }
  0x69   :  { %p1211_p4 = scmp.ne.s32.totalorder %s1651_s24, %s1210_s20  ;;  %p1214_p5 = scmp.lt.u32.totalorder %s1210_s20, %s1651_s24 }
  0x6b   :  { %p1216_p6 = pnand %p1214_p5, %p1211_p4 }
  0x6d   :  { %1219 = shalt.err (!%p1216_p6)
}
  0x6e   :  { %s1220_s30 = scalar_lea.vmem %s64_s4, 256  ;;  %p1225_p8 = scmp.lt.s32.totalorder %s64_s4, %s64_s4 }
  0x6f   :  { %p1221_p7 = scmp.ne.s32.totalorder %s64_s4, %s1220_s30  ;;  %p1226_p9 = scmp.lt.s32.totalorder %s1220_s30, %s1220_s30 }
  0x71   :  { %p1227_p10 = por %p1226_p9, %p1225_p8 }
  0x73   :  { %p1228_p11 = pnand %p1227_p10, %p1221_p7 }
  0x75   :  { %1231 = shalt.err (!%p1228_p11)
}
  0x76   :  { %69 = dma.hbm_to_vmem [thread:$0]  %s1651_s24, 256, %s64_s4, [#allocation6], %s1650_s8, %s1650_s8, %s1287_s2  }
  0x77   :  { %s1232_s21 = scalar_lea.hbm %s1618_s6, 16 }
  0x78   :  { %p1233_p12 = scmp.ne.s32.totalorder %s1618_s6, %s1232_s21  ;;  %p1236_p13 = scmp.lt.u32.totalorder %s1232_s21, %s1618_s6 }
  0x7a   :  { %p1238_p0 = pnand %p1236_p13, %p1233_p12 }
  0x7c   :  { %1241 = shalt.err (!%p1238_p0)
}
  0x7d   :  { %s1242_s23 = scalar_lea.vmem %s89_s26, 16  ;;  %s1246_s1 = scalar_lea.vmem %s89_s26, 32 }
  0x7e   :  { %p1243_p1 = scmp.ne.s32.totalorder %s89_s26, %s1242_s23  ;;  %p1247_p2 = scmp.lt.s32.totalorder %s89_s26, %s89_s26 }
  0x7f   :  { %p1248_p3 = scmp.lt.s32.totalorder %s1246_s1, %s1242_s23 }
  0x81   :  { %p1249_p4 = por %p1248_p3, %p1247_p2 }
  0x83   :  { %p1250_p5 = pnand %p1249_p4, %p1243_p1 }
  0x85   :  { %1253 = shalt.err (!%p1250_p5)
}
  0x86   :  { %91 = dma.hbm_to_vmem [thread:$0]  %s1618_s6, 16, %s89_s26, [#allocation9]  }
  0x87   :  { %s1292_s27 = smov [#allocation13]   ;;  %s1254_s28 = scalar_lea.hbm %s1627_s15, 512 }
  0x88   :  { %s121_s30 = sshll.u32 %s1292_s27, 4  ;;  %p1255_p6 = scmp.ne.s32.totalorder %s1627_s15, %s1254_s28  ;;  %s122_s30 = int_to_ptr.vmem [resolvable:$true] %s121_s30 }
  0x89   :  { %p1258_p7 = scmp.lt.u32.totalorder %s1254_s28, %s1627_s15 }
  0x8b   :  { %p1260_p8 = pnand %p1258_p7, %p1255_p6 }
  0x8d   :  { %1263 = shalt.err (!%p1260_p8)
}
  0x8e   :  { %s1264_s22 = scalar_lea.vmem %s122_s30, 512  ;;  %p1269_p10 = scmp.lt.s32.totalorder %s122_s30, %s122_s30 }
  0x8f   :  { %p1265_p9 = scmp.ne.s32.totalorder %s122_s30, %s1264_s22  ;;  %p1270_p11 = scmp.lt.s32.totalorder %s1264_s22, %s1264_s22 }
  0x91   :  { %p1271_p12 = por %p1270_p11, %p1269_p10 }
  0x93   :  { %p1272_p13 = pnand %p1271_p12, %p1265_p9 }
  0x95   :  { %1275 = shalt.err (!%p1272_p13)
}
  0x96   :  { %127 = dma.hbm_to_vmem [thread:$0]  %s1627_s15, 512, %s122_s30, [#allocation12], %s1650_s8, %s1650_s8, %s1287_s2  }
  0x97   :  { %1276 = dma.done.wait [#allocation4], 256  }
  0x98   :  { %1277 = vsyncadd [#allocation4], 4294967040 }
  0x99   :  { %1278 = dma.done.wait [#allocation6], 512  }
  0x9a   :  { %1279 = vsyncadd [#allocation6], 4294966784 }
  0x9b   :  { %1280 = dma.done.wait [#allocation9], 32  }
  0x9c   :  { %1281 = vsyncadd [#allocation9], 4294967264 }
  0x9d   :  { %1282 = dma.done.wait [#allocation12], 528  }
  0x9e   :  { %1283 = vsyncadd [#allocation12], 4294966768  ;;  %vm161_vm0 = vcmask 130048   ;;  %v174_v1 = vld [vmem:[#allocation7] sm:$0xff]  ;;  %v175_v2 = vld [vmem:[#allocation7 + $0x8] sm:$0xff]  ;;  %s1652_s8 = sld [smem:[#allocation22_spill]] }
  0x9f   :  { %v172_v3 = vld [vmem:[#allocation3] sm:$0xff]  ;;  %v1065_v4 = vpack.c.bf16 %v175_v2, %v174_v1  ;;  %v159_v5 = vld [vmem:[#allocation5] sm:$0xff]  ;;  %v1521_v6 = vld [vmem:[#allocation5 + $0x8] sm:$0xff]  ;;  %vm380_vm1 = vcmask 261120   ;;  %v1293_v50 = vmov 0.0|0.0   ;;  %vm1294_vm2 = vmmov 0  }
  0xa0   :  { %997 = vmatprep.mubr.msk.f32.mxu1 %vm161_vm0, %v172_v3  ;;  %v162_v7 = vsel %vm161_vm0, %v159_v5, 0.0  ;;  %v173_v8 = vld [vmem:[#allocation3 + $0x8] sm:$0xff]  ;;  %v165_v9 = vsel %vm161_vm0, %v1521_v6, 0.0  ;;  %v369_v24 = vld [vmem:[%s1619_s7] sm:$0xff]  ;;  %v372_v28 = vld [vmem:[%s1619_s7 + $0x18] sm:$0xff]  ;;  %v1295_v51 = vmov 0.0  }
  0xa1   :  { %1066 = vmatprep.subr.bf16.mxu1 %v1065_v4  ;;  %163 = vadd.xlane.f32.xlu0 %v162_v7  ;;  %v370_v25 = vld [vmem:[%s1619_s7 + $0x8] sm:$0xff]  ;;  %v371_v27 = vld [vmem:[%s1619_s7 + $0x10] sm:$0xff]  ;;  %v636_v52 = vld [vmem:[%s1623_s11] sm:$0xff]  ;;  %s1653_s15 = sld [smem:[#allocation20_spill]]  ;;  %vm922_vm3 = vcmask 1024   ;;  %s1654_s6 = sld [smem:[#allocation24_spill]] }
  0xa2   :  { %1068 = vmatpush3.bf16.msra.mxu1 %v1065_v4  ;;  %v1073_v26 = vpack.c.bf16 %v370_v25, %v369_v24  ;;  %v1077_v29 = vpack.c.bf16 %v372_v28, %v371_v27  ;;  %v937_v33 = vld [vmem:[#allocation8] ss:$0 sm:$0xff]  ;;  %v938_v38 = vld [vmem:[#allocation10] ss:$0 sm:$0xff]  ;;  %v939_v42 = vld [vmem:[#allocation11] ss:$0 sm:$0xff] }
  0xa3   :  { %v637_v53 = vld [vmem:[%s1623_s11 + $0x8] sm:$0xff]  ;;  %v944_v58 = vld [vmem:[%s1621_s9] ss:$0 sm:$0xff] }
  0xa4   :  { %v932_v14 = vld [vmem:[%s1652_s8] ss:$0 sm:$0xff]  ;;  %1074 = vmatprep.subr.bf16.mxu0 %v1073_v26  ;;  %v1089_v54 = vpack.c.bf16 %v637_v53, %v636_v52  ;;  %v839_v27 = vld [vmem:[%s1631_s19 + $0x8] sm:$0xff] }
  0xa5   :  { %998 = vmatmul.mubr.msk.f32.vlgmr.msra.gmra.mrb[0].mxu1 %vm161_vm0, %v173_v8  ;;  %166 = vadd.xlane.f32.xlu0 %v165_v9  ;;  %v945_v61 = vld [vmem:[%s1622_s10] ss:$0 sm:$0xff] }
  0xa6   :  { %1004 = vmatprep.mubr.msk.f32.mxu1 %vm161_vm0, %v159_v5  ;;  %1076 = vmatpush3.bf16.msra.mxu0 %v1073_v26  ;;  %v838_v26 = vld [vmem:[%s1631_s19] sm:$0xff] }
  0xa7   :  { %1078 = vmatprep.subr.bf16.mxu0 %v1077_v29  ;;  %v561_v4 = vld [vmem:[%s1653_s15] sm:$0x3]  ;;  %v1101_v28 = vpack.c.bf16 %v839_v27, %v838_v26 }
  0xaa   :  { %1080 = vmatpush3.bf16.msra.mxu0 %v1077_v29  ;;  %v840_v29 = vld [vmem:[%s1631_s19 + $0x10] sm:$0xff] }
  0xab   :  { %1088 = vmatprep.subr.bf16.mxu0 %v1293_v50 }
 0x12e   :  { %v164_v10 = vpop.xlane.xlu0 %163 }
 0x12f   :  { %v168_v13 = vadd.f32 1e-07, %v164_v10 }
 0x132   :  { %v167_v11 = vpop.xlane.xlu0 %166 }
 0x133   :  { %v169_v12 = vadd.f32 1e-07, %v167_v11  ;;  %v737_v11 = vld [vmem:[#allocation13] sm:$0xff] }
 0x135   :  { %1118 = vrsqrt.f32 %v169_v12  ;;  %v738_v12 = vld [vmem:[#allocation13 + $0x8] sm:$0xff] }
 0x136   :  { %1120 = vrsqrt.f32 %v168_v13  ;;  %v1095_v13 = vpack.c.bf16 %v738_v12, %v737_v11 }
 0x13f   :  { %v1119_v15 = vpop.eup %1118 }
 0x140   :  { %v1121_v20 = vpop.eup %1120 }
 0x178   :  { %v999_v16 = vpop.f32.mrb[0].mxu1 }
 0x179   :  { %v261_v17 = vadd.f32 %v999_v16, %v932_v14  ;;  %v255_v18 = vpop.f32.mrb[1].mxu1 }
 0x17a   :  { %v256_v19 = vadd.f32 %v932_v14, %v255_v18  ;;  %v739_v14 = vld [vmem:[#allocation13 + $0x10] sm:$0xff] }
 0x17b   :  { %v265_v21 = vmul.f32 %v1119_v15, %v261_v17  ;;  %v947_v17 = vld [vmem:[%s1624_s12] ss:$0 sm:$0xff] }
 0x17c   :  { %v264_v22 = vmul.f32 %v1121_v20, %v256_v19 }
 0x17e   :  { %v1069_v23 = vpack.c.bf16 %v265_v21, %v264_v22  ;;  %v949_v21 = vld [vmem:[%s1625_s13] ss:$0 sm:$0xff] }
 0x180   :  { %1070 = vmatprep.subr.bf16.mxu1 %v1069_v23 }
 0x181   :  { %1072 = vmatpush3.bf16.msra.mxu1 %v1069_v23  ;;  %v950_v23 = vld [vmem:[%s1626_s14] ss:$0 sm:$0xff] }
 0x184   :  { %1005 = vmatmul.mubr.msk.f32.vlgmr.msra.gmra.mrb[2].mxu1 %vm161_vm0, %v1521_v6 }
 0x185   :  { %1022 = vmatprep.mubr.msk.f32.mxu1 %vm161_vm0, %v159_v5  ;;  %v638_v5 = vld [vmem:[%s1623_s11 + $0x10] sm:$0xff] }
 0x257   :  { %v1006_v30 = vpop.f32.mrb[2].mxu1 }
 0x258   :  { %v348_v31 = vmul.f32 %v1119_v15, %v1006_v30  ;;  %v338_v32 = vpop.f32.mrb[3].mxu1  ;;  %v841_v30 = vld [vmem:[%s1631_s19 + $0x18] sm:$0xff] }
 0x259   :  { %v347_v34 = vmul.f32 %v1121_v20, %v338_v32  ;;  %v951_v32 = vld [vmem:[%s1628_s16] ss:$0 sm:$0xff] }
 0x25a   :  { %v350_v35 = vmax.f32 %v348_v31, 0.0  ;;  %v1104_v31 = vpack.c.bf16 %v841_v30, %v840_v29 }
 0x25b   :  { %v349_v36 = vmax.f32 %v347_v34, 0.0 }
 0x25c   :  { %v359_v37 = vmul.f32 %v937_v33, %v350_v35 }
 0x25d   :  { %v358_v39 = vmul.f32 %v937_v33, %v349_v36  ;;  %v953_v36 = vld [vmem:[%s1629_s17] ss:$0 sm:$0xff] }
 0x25e   :  { %v368_v41 = vadd.f32 %v938_v38, %v359_v37 }
 0x25f   :  { %v367_v40 = vadd.f32 %v938_v38, %v358_v39  ;;  %v954_v38 = vld [vmem:[%s1630_s18] ss:$0 sm:$0xff] }
 0x261   :  { %1015 = vmatprep.mubr.msk.f32.mxu0 %vm380_vm1, %v367_v40 }
 0x262   :  { %1016 = vmatmul.mubr.msk.f32.vlgmr.msra.gmra.mrb[0].mxu0 %vm380_vm1, %v368_v41  ;;  %v955_v41 = vld [vmem:[#allocation2] ss:$0 sm:$0xff] }
 0x263   :  { %1040 = vmatprep.mubr.msk.f32.mxu0 %vm1294_vm2, %v1295_v51  ;;  %1090 = vmatpush3.bf16.msra.mxu0 %v1089_v54 }
 0x264   :  { %1091 = vmatprep.subr.bf16.mxu0 %v1293_v50 }
 0x335   :  { %v1017_v43 = vpop.f32.mrb[0].mxu0 }
 0x336   :  { %v459_v44 = vadd.f32 %v1017_v43, %v939_v42  ;;  %v453_v45 = vpop.f32.mrb[1].mxu0 }
 0x337   :  { %v454_v46 = vadd.f32 %v939_v42, %v453_v45 }
 0x338   :  { %v463_v47 = vmul.f32 %v1119_v15, %v459_v44 }
 0x339   :  { %v462_v48 = vmul.f32 %v1121_v20, %v454_v46 }
 0x33b   :  { %v1081_v49 = vpack.c.bf16 %v463_v47, %v462_v48 }
 0x33d   :  { %1082 = vmatprep.subr.bf16.mxu1 %v1081_v49 }
 0x33e   :  { %1084 = vmatpush3.bf16.msra.mxu1 %v1081_v49 }
 0x33f   :  { %1085 = vmatprep.subr.bf16.mxu1 %v1293_v50 }
 0x341   :  { %1023 = vmatmul.mubr.msk.f32.vlgmr.msra.gmra.mrb[4].mxu1 %vm161_vm0, %v1521_v6  ;;  %v639_v6 = vld [vmem:[%s1623_s11 + $0x18] sm:$0xff] }
 0x342   :  { %1029 = vmatprep.mubr.msk.f32.mxu1 %vm1294_vm2, %v1295_v51  ;;  %v1092_v7 = vpack.c.bf16 %v639_v6, %v638_v5 }
 0x344   :  { %1093 = vmatpush3.bf16.msra.mxu0 %v1092_v7 }
 0x345   :  { %1100 = vmatprep.subr.bf16.mxu0 %v1293_v50 }
 0x414   :  { %v1024_v55 = vpop.f32.mrb[4].mxu1 }
 0x415   :  { %v540_v56 = vmul.f32 %v1119_v15, %v1024_v55  ;;  %v530_v57 = vpop.f32.mrb[5].mxu1  ;;  %v740_v15 = vld [vmem:[#allocation13 + $0x18] sm:$0xff] }
 0x416   :  { %v539_v59 = vmul.f32 %v1121_v20, %v530_v57  ;;  %v1098_v16 = vpack.c.bf16 %v740_v15, %v739_v14 }
 0x417   :  { %v542_v60 = vmax.f32 %v540_v56, 0.0 }
 0x418   :  { %v541_v62 = vmax.f32 %v539_v59, 0.0 }
 0x419   :  { %v551_v63 = vmul.f32 %v944_v58, %v542_v60 }
 0x41a   :  { %v550_v0 = vmul.f32 %v944_v58, %v541_v62 }
 0x41b   :  { %v560_v1 = vadd.f32 %v945_v61, %v551_v63 }
 0x41c   :  { %v559_v2 = vadd.f32 %v945_v61, %v550_v0 }
 0x41e   :  { %v1086_v3 = vpack.c.bf16 %v560_v1, %v559_v2 }
 0x420   :  { %1087 = vmatpush3.bf16.msra.mxu1 %v1086_v3 }
 0x421   :  { %1094 = vmatprep.subr.bf16.mxu1 %v1293_v50 }
 0x423   :  { %1030 = vmatmul.mubr.msk.f32.vlgmr.msra.gmra.mrb[6].mxu1 %vm161_vm0, %v561_v4 }
 0x424   :  { %1051 = vmatprep.mubr.msk.f32.mxu1 %vm1294_vm2, %v1295_v51  ;;  %1096 = vmatpush3.bf16.msra.mxu1 %v1095_v13 }
 0x425   :  { %1097 = vmatprep.subr.bf16.mxu1 %v1293_v50 }
 0x428   :  { %1099 = vmatpush3.bf16.msra.mxu1 %v1098_v16 }
 0x4f6   :  { %v631_v8 = vpop.f32.mrb[6].mxu1 }
 0x4f7   :  { %v635_v9 = vmul.f32 0.125, %v631_v8  ;;  %v1031_v10 = vpop.f32.mrb[7].mxu1 }
 0x4f9   :  { %1041 = vmatmul.mubr.msk.f32.vlgmr.msra.gmra.mrb[2].mxu0 %vm380_vm1, %v635_v9 }
 0x4fa   :  { %1062 = vmatprep.mubr.msk.f32.mxu0 %vm1294_vm2, %v1295_v51  ;;  %1102 = vmatpush3.bf16.msra.mxu0 %v1101_v28 }
 0x4fb   :  { %1103 = vmatprep.subr.bf16.mxu0 %v1293_v50 }
 0x4fe   :  { %1105 = vmatpush3.bf16.msra.mxu0 %v1104_v31 }
 0x5cc   :  { %v716_v18 = vpop.f32.mrb[2].mxu0 }
 0x5cd   :  { %v717_v19 = vadd.f32 %v947_v17, %v716_v18  ;;  %v1042_v20 = vpop.f32.mrb[3].mxu0 }
 0x5cf   :  { %v720_v22 = vmax.f32 %v717_v19, 0.0 }
 0x5d1   :  { %v728_v24 = vmul.f32 %v949_v21, %v720_v22 }
 0x5d3   :  { %v736_v25 = vadd.f32 %v950_v23, %v728_v24 }
 0x5d5   :  { %1052 = vmatmul.mubr.msk.f32.vlgmr.msra.gmra.mrb[8].mxu1 %vm380_vm1, %v736_v25 }
 0x6a8   :  { %v817_v33 = vpop.f32.mrb[8].mxu1 }
 0x6a9   :  { %v818_v34 = vadd.f32 %v951_v32, %v817_v33  ;;  %v1053_v35 = vpop.f32.mrb[9].mxu1 }
 0x6ab   :  { %v821_v37 = vmax.f32 %v818_v34, 0.0 }
 0x6ad   :  { %v829_v39 = vmul.f32 %v953_v36, %v821_v37 }
 0x6af   :  { %v837_v40 = vadd.f32 %v954_v38, %v829_v39 }
 0x6b1   :  { %1063 = vmatmul.mubr.msk.f32.vlgmr.msra.gmra.mrb[4].mxu0 %vm380_vm1, %v837_v40 }
 0x784   :  { %v918_v42 = vpop.f32.mrb[4].mxu0 }
 0x785   :  { %v919_v43 = vadd.f32 %v955_v41, %v918_v42  ;;  %v1064_v44 = vpop.f32.mrb[5].mxu0 }
 0x787   :  { %923 = vst.msk [vmem:[%s1654_s6] sm:$0x3] %vm922_vm3, %v919_v43 }
 0x788   :  { %928 = vsyncpa [#allocation4], 1 }
 0x789   :  { %929 = vsyncpa [#allocation6], 1 }
 0x78a   :  { %930 = vsyncpa [#allocation9], 1 }
 0x78b   :  { %931 = vsyncpa [#allocation12], 1 }

</bundles_post_ra>
